<compile_context>
chip_gen: v7x
topology: tpu7x:2x2x1
jax: 0.10.0
libtpu: 0.0.40
codegen_flags: <defaults>
</compile_context>

<pallas_src>
import jax
import jax.numpy as jnp
from jax.experimental import pallas as pl
from jax.experimental.pallas import tpu as pltpu

IN_FEATURES = 12   # 4 chunks of size 3 (unfold(1, 3, 3))
N_CHUNKS_1 = 4     # layer-1 outputs
N_CHUNKS_2 = 2     # layer-2 outputs

# Compile-time constants (exactly the torch __init__ parameters).
L1_W = ((2.59, -2.83, 0.87), (-1.22, 0.45, 0.88))   # alternating (1,3) weights
L2_W = ((-1.38, 1.29), (0.35, -0.73))               # alternating (1,2) weights
L3_W = (0.86, -0.84)                                 # single (1,2) weight


def split_filter_kernel(x_ref, o_ref):
    """x_ref: (12, TB) feature-major tile; o_ref: (1, TB) lane-dense output."""
    x = x_ref[...]  # (12, TB) f32

    # Layer 1: per-chunk linear (chunks of 3, alternating weights) + relu.
    h1 = []
    for j in range(N_CHUNKS_1):
        w = L1_W[j % 2]
        r = (w[0] * x[3 * j + 0:3 * j + 1, :]
             + w[1] * x[3 * j + 1:3 * j + 2, :]
             + w[2] * x[3 * j + 2:3 * j + 3, :])          # (1, TB)
        h1.append(jnp.maximum(r, 0.0))

    # Layer 2: per-chunk linear (chunks of 2, alternating weights) + tanh.
    h2 = []
    for j in range(N_CHUNKS_2):
        w = L2_W[j % 2]
        r = w[0] * h1[2 * j] + w[1] * h1[2 * j + 1]        # (1, TB)
        h2.append(jnp.tanh(r))

    # Layer 3: (1, 2) linear + sigmoid.
    r = L3_W[0] * h2[0] + L3_W[1] * h2[1]                  # (1, TB)
    o_ref[...] = jax.nn.sigmoid(r).astype(o_ref.dtype)


def split_filter_cnn(x, *, tb=None):
    """x: (B, 12) float32 -> (B, 1, 1), matching torch's x3.unsqueeze(1)."""
    B = x.shape[0]
    if tb is None:
        # Big enough to amortize per-step overhead for large B, small enough
        # not to over-pad tiny batches; input buffer is ~16*tb*4 B per slot,
        # comfortably inside every generation's scoped-VMEM default.
        tb = min(8192, pl.cdiv(B, 128) * 128)

    n_tiles = pl.cdiv(B, tb)
    Bp = n_tiles * tb

    xT = x.T                                   # (12, B)  feature-major
    if Bp != B:
        xT = jnp.pad(xT, ((0, 0), (0, Bp - B)))

    out = pl.pallas_call(
        split_filter_kernel,
        out_shape=jax.ShapeDtypeStruct((1, Bp), x.dtype),
        grid=(n_tiles,),
        in_specs=[pl.BlockSpec((IN_FEATURES, tb), lambda i: (0, i))],
        out_specs=pl.BlockSpec((1, tb), lambda i: (0, i)),
        compiler_params=pltpu.CompilerParams(
            dimension_semantics=("parallel",)),
    )(xT)

    return out[0, :B][:, None, None]           # (B, 1, 1)


def reference_forward(x):
    """Pure-JAX mirror of the torch chunk loops, for validation."""
    out1 = []
    for i in range(IN_FEATURES // 3):
        w = jnp.array([L1_W[i % 2]], jnp.float32)        # (1, 3)
        chunk = x[:, 3 * i:3 * i + 3]                    # (B, 3)
        out1.append(jnp.maximum(chunk @ w.T, 0.0))       # (B, 1)
    x1 = jnp.concatenate(out1, axis=1)                   # (B, 4)
    out2 = []
    for i in range(N_CHUNKS_1 // 2):
        w = jnp.array([L2_W[i % 2]], jnp.float32)        # (1, 2)
        chunk = x1[:, 2 * i:2 * i + 2]
        out2.append(jnp.tanh(chunk @ w.T))
    x2 = jnp.concatenate(out2, axis=1)                   # (B, 2)
    w3 = jnp.array([L3_W], jnp.float32)                  # (1, 2)
    x3 = jax.nn.sigmoid(x2 @ w3.T)                       # (B, 1)
    return x3[:, None, :]                                # (B, 1, 1)


if __name__ == "__main__":
    key = jax.random.PRNGKey(0)
    B = 8
    x = jax.random.normal(key, (B, IN_FEATURES), dtype=jnp.float32)

    out = jax.block_until_ready(split_filter_cnn(x))
    ref = reference_forward(x)

    assert out.shape == (B, 1, 1), out.shape
    assert jnp.allclose(out, ref, atol=1e-5, rtol=1e-5), (out, ref)
    print("KERNEL_OK")
</pallas_src>

<mosaic_0001>
module attributes {stable_mosaic.version = 11 : i64} {
  func.func @split_filter_kernel(%arg0: i32, %arg1: memref<12x128xf32, #tpu.memory_space<vmem>>, %arg2: memref<1x128xf32, #tpu.memory_space<vmem>>) attributes {dimension_semantics = [#tpu.dimension_semantics<parallel>], iteration_bounds = array<i64: 1>, scalar_prefetch = 0 : i64, scratch_operands = 0 : i64, tpu.core_type = #tpu.core_type<tc>, window_params = [{transform_indices = @transform_0, window_bounds = array<i64: 12, 128>}, {transform_indices = @transform_1, window_bounds = array<i64: 1, 128>}]} {
    %c0 = arith.constant 0 : index
    %c0_0 = arith.constant 0 : index
    %0 = vector.load %arg1[%c0, %c0_0] : memref<12x128xf32, #tpu.memory_space<vmem>>, vector<12x128xf32>
    %1 = vector.extract_strided_slice %0 {offsets = [0, 0], sizes = [1, 128], strides = [1, 1]} : vector<12x128xf32> to vector<1x128xf32>
    %cst = arith.constant 2.590000e+00 : f32
    %2 = vector.broadcast %cst : f32 to vector<1x128xf32>
    %3 = arith.mulf %2, %1 : vector<1x128xf32>
    %4 = vector.extract_strided_slice %0 {offsets = [1, 0], sizes = [1, 128], strides = [1, 1]} : vector<12x128xf32> to vector<1x128xf32>
    %cst_1 = arith.constant -2.830000e+00 : f32
    %5 = vector.broadcast %cst_1 : f32 to vector<1x128xf32>
    %6 = arith.mulf %5, %4 : vector<1x128xf32>
    %7 = arith.addf %3, %6 : vector<1x128xf32>
    %8 = vector.extract_strided_slice %0 {offsets = [2, 0], sizes = [1, 128], strides = [1, 1]} : vector<12x128xf32> to vector<1x128xf32>
    %cst_2 = arith.constant 8.700000e-01 : f32
    %9 = vector.broadcast %cst_2 : f32 to vector<1x128xf32>
    %10 = arith.mulf %9, %8 : vector<1x128xf32>
    %11 = arith.addf %7, %10 : vector<1x128xf32>
    %cst_3 = arith.constant 0.000000e+00 : f32
    %12 = vector.broadcast %cst_3 : f32 to vector<1x128xf32>
    %13 = arith.maximumf %11, %12 : vector<1x128xf32>
    %14 = vector.extract_strided_slice %0 {offsets = [3, 0], sizes = [1, 128], strides = [1, 1]} : vector<12x128xf32> to vector<1x128xf32>
    %cst_4 = arith.constant -1.220000e+00 : f32
    %15 = vector.broadcast %cst_4 : f32 to vector<1x128xf32>
    %16 = arith.mulf %15, %14 : vector<1x128xf32>
    %17 = vector.extract_strided_slice %0 {offsets = [4, 0], sizes = [1, 128], strides = [1, 1]} : vector<12x128xf32> to vector<1x128xf32>
    %cst_5 = arith.constant 4.500000e-01 : f32
    %18 = vector.broadcast %cst_5 : f32 to vector<1x128xf32>
    %19 = arith.mulf %18, %17 : vector<1x128xf32>
    %20 = arith.addf %16, %19 : vector<1x128xf32>
    %21 = vector.extract_strided_slice %0 {offsets = [5, 0], sizes = [1, 128], strides = [1, 1]} : vector<12x128xf32> to vector<1x128xf32>
    %cst_6 = arith.constant 0.879999995 : f32
    %22 = vector.broadcast %cst_6 : f32 to vector<1x128xf32>
    %23 = arith.mulf %22, %21 : vector<1x128xf32>
    %24 = arith.addf %20, %23 : vector<1x128xf32>
    %cst_7 = arith.constant 0.000000e+00 : f32
    %25 = vector.broadcast %cst_7 : f32 to vector<1x128xf32>
    %26 = arith.maximumf %24, %25 : vector<1x128xf32>
    %27 = vector.extract_strided_slice %0 {offsets = [6, 0], sizes = [1, 128], strides = [1, 1]} : vector<12x128xf32> to vector<1x128xf32>
    %cst_8 = arith.constant 2.590000e+00 : f32
    %28 = vector.broadcast %cst_8 : f32 to vector<1x128xf32>
    %29 = arith.mulf %28, %27 : vector<1x128xf32>
    %30 = vector.extract_strided_slice %0 {offsets = [7, 0], sizes = [1, 128], strides = [1, 1]} : vector<12x128xf32> to vector<1x128xf32>
    %cst_9 = arith.constant -2.830000e+00 : f32
    %31 = vector.broadcast %cst_9 : f32 to vector<1x128xf32>
    %32 = arith.mulf %31, %30 : vector<1x128xf32>
    %33 = arith.addf %29, %32 : vector<1x128xf32>
    %34 = vector.extract_strided_slice %0 {offsets = [8, 0], sizes = [1, 128], strides = [1, 1]} : vector<12x128xf32> to vector<1x128xf32>
    %cst_10 = arith.constant 8.700000e-01 : f32
    %35 = vector.broadcast %cst_10 : f32 to vector<1x128xf32>
    %36 = arith.mulf %35, %34 : vector<1x128xf32>
    %37 = arith.addf %33, %36 : vector<1x128xf32>
    %cst_11 = arith.constant 0.000000e+00 : f32
    %38 = vector.broadcast %cst_11 : f32 to vector<1x128xf32>
    %39 = arith.maximumf %37, %38 : vector<1x128xf32>
    %40 = vector.extract_strided_slice %0 {offsets = [9, 0], sizes = [1, 128], strides = [1, 1]} : vector<12x128xf32> to vector<1x128xf32>
    %cst_12 = arith.constant -1.220000e+00 : f32
    %41 = vector.broadcast %cst_12 : f32 to vector<1x128xf32>
    %42 = arith.mulf %41, %40 : vector<1x128xf32>
    %43 = vector.extract_strided_slice %0 {offsets = [10, 0], sizes = [1, 128], strides = [1, 1]} : vector<12x128xf32> to vector<1x128xf32>
    %cst_13 = arith.constant 4.500000e-01 : f32
    %44 = vector.broadcast %cst_13 : f32 to vector<1x128xf32>
    %45 = arith.mulf %44, %43 : vector<1x128xf32>
    %46 = arith.addf %42, %45 : vector<1x128xf32>
    %47 = vector.extract_strided_slice %0 {offsets = [11, 0], sizes = [1, 128], strides = [1, 1]} : vector<12x128xf32> to vector<1x128xf32>
    %cst_14 = arith.constant 0.879999995 : f32
    %48 = vector.broadcast %cst_14 : f32 to vector<1x128xf32>
    %49 = arith.mulf %48, %47 : vector<1x128xf32>
    %50 = arith.addf %46, %49 : vector<1x128xf32>
    %cst_15 = arith.constant 0.000000e+00 : f32
    %51 = vector.broadcast %cst_15 : f32 to vector<1x128xf32>
    %52 = arith.maximumf %50, %51 : vector<1x128xf32>
    %cst_16 = arith.constant -1.380000e+00 : f32
    %53 = vector.broadcast %cst_16 : f32 to vector<1x128xf32>
    %54 = arith.mulf %53, %13 : vector<1x128xf32>
    %cst_17 = arith.constant 1.290000e+00 : f32
    %55 = vector.broadcast %cst_17 : f32 to vector<1x128xf32>
    %56 = arith.mulf %55, %26 : vector<1x128xf32>
    %57 = arith.addf %54, %56 : vector<1x128xf32>
    %58 = math.tanh %57 : vector<1x128xf32>
    %cst_18 = arith.constant 3.500000e-01 : f32
    %59 = vector.broadcast %cst_18 : f32 to vector<1x128xf32>
    %60 = arith.mulf %59, %39 : vector<1x128xf32>
    %cst_19 = arith.constant -7.300000e-01 : f32
    %61 = vector.broadcast %cst_19 : f32 to vector<1x128xf32>
    %62 = arith.mulf %61, %52 : vector<1x128xf32>
    %63 = arith.addf %60, %62 : vector<1x128xf32>
    %64 = math.tanh %63 : vector<1x128xf32>
    %cst_20 = arith.constant 8.600000e-01 : f32
    %65 = vector.broadcast %cst_20 : f32 to vector<1x128xf32>
    %66 = arith.mulf %65, %58 : vector<1x128xf32>
    %cst_21 = arith.constant -0.839999973 : f32
    %67 = vector.broadcast %cst_21 : f32 to vector<1x128xf32>
    %68 = arith.mulf %67, %64 : vector<1x128xf32>
    %69 = arith.addf %66, %68 : vector<1x128xf32>
    %70 = arith.negf %69 : vector<1x128xf32>
    %71 = math.exp %70 : vector<1x128xf32>
    %cst_22 = arith.constant 1.000000e+00 : f32
    %72 = vector.broadcast %cst_22 : f32 to vector<1x128xf32>
    %73 = arith.addf %72, %71 : vector<1x128xf32>
    %74 = arith.divf %72, %73 : vector<1x128xf32>
    %c0_23 = arith.constant 0 : index
    %c0_24 = arith.constant 0 : index
    %75 = vector.load %arg2[%c0_23, %c0_24] : memref<1x128xf32, #tpu.memory_space<vmem>>, vector<1x128xf32>
    tpu.vector_store %arg2[%c0_23, %c0_24], %74 {strides = array<i32>} : memref<1x128xf32, #tpu.memory_space<vmem>>, vector<1x128xf32>,
    return
  }
  func.func @transform_0(%arg0: i32) -> (i32, i32) {
    %c0_i32 = arith.constant 0 : i32
    %c0_i32_0 = arith.constant 0 : i32
    return %c0_i32, %arg0 : i32, i32
  }
  func.func @transform_1(%arg0: i32) -> (i32, i32) {
    %c0_i32 = arith.constant 0 : i32
    %c0_i32_0 = arith.constant 0 : i32
    return %c0_i32, %arg0 : i32, i32
  }
}

</mosaic_0001>

<bundles_post_ra>
// kernel: tpu_custom_call.1
= control target key start
LH: loop header
LB: loop body
LE: loop exit
PB: predicated region body
PF: predicated region fallthrough
CT: control target
= control target key end

     0   :  { %6 = vsyncpa [#allocation3], 0  ;;  %s208_s0 = inlined_call_operand.hbm [shape: f32[12,128], index: 0, kind: input, shape index: {}]   ;;  %s209_s1 = inlined_call_operand.hbm [shape: f32[1,128], index: 1, kind: output, shape index: {}]  }
   0x1   :  { %7 = vsyncpa [#allocation4], 0  ;;  %s170_s6 = smov [#allocation2]   ;;  %s122_s10 = scalar_lea.hbm %s208_s0, 256 }
   0x2   :  { %s13_s7 = sshll.u32 %s170_s6, 4  ;;  %p123_p0 = scmp.ne.s32.totalorder %s208_s0, %s122_s10  ;;  %s14_s7 = int_to_ptr.vmem [resolvable:$true] %s13_s7 }
   0x3   :  { %p126_p1 = scmp.lt.u32.totalorder %s122_s10, %s208_s0 }
   0x5   :  { %p128_p2 = pnand %p126_p1, %p123_p0 }
   0x7   :  { %131 = shalt.err (!%p128_p2)
}
   0x8   :  { %s132_s15 = scalar_lea.vmem %s14_s7, 256  ;;  %p137_p4 = scmp.lt.s32.totalorder %s14_s7, %s14_s7 }
   0x9   :  { %p133_p3 = scmp.ne.s32.totalorder %s14_s7, %s132_s15  ;;  %p138_p5 = scmp.lt.s32.totalorder %s132_s15, %s132_s15 }
   0xb   :  { %p139_p6 = por %p138_p5, %p137_p4 }
   0xd   :  { %p140_p7 = pnand %p139_p6, %p133_p3 }
   0xf   :  { %143 = shalt.err (!%p140_p7)
}
  0x10   :  { %s171_s16 = smov 128   ;;  %s172_s17 = smov 8  }
  0x11   :  { %19 = dma.hbm_to_vmem [thread:$0]  %s208_s0, 256, %s14_s7, [#allocation3], %s171_s16, %s171_s16, %s172_s17  }
  0x12   :  { %166 = dma.done.wait [#allocation3], 256  }
  0x13   :  { %167 = vsyncadd [#allocation3], 4294967040  ;;  %v23_v0 = vld [vmem:[#allocation2] sm:$0xff]  ;;  %v24_v1 = vld [vmem:[#allocation2 + $0x8] sm:$0xf]  ;;  %s173_s0 = smov [#allocation5]  }
  0x14   :  { %v25_v2 = vmul.f32 2.59, %v23_v0  ;;  %v26_v3 = vmul.f32 -2.83, %v23_v0  ;;  %v31_v4 = vmul.f32 0.87, %v23_v0 }
  0x15   :  { %v37_v5 = vmul.f32 -1.22, %v23_v0  ;;  %v38_v6 = vmul.f32 0.45, %v23_v0  ;;  %v43_v7 = vmul.f32 0.88, %v23_v0 }
  0x16   :  { %v28_v8 = vrot.slane %v26_v3, 1  ;;  %v33_v9 = vrot.slane %v31_v4, 2  ;;  %v49_v10 = vmul.f32 0.87, %v24_v1  ;;  %v55_v11 = vmul.f32 -1.22, %v24_v1 }
  0x17   :  { %v40_v12 = vrot.slane %v38_v6, 1  ;;  %v45_v13 = vrot.slane %v43_v7, 2  ;;  %v56_v14 = vmul.f32 0.45, %v24_v1  ;;  %v61_v15 = vmul.f32 0.88, %v24_v1 }
  0x18   :  { %v30_v16 = vadd.f32 %v28_v8, %v25_v2  ;;  %v51_v17 = vrot.slane %v49_v10, 2  ;;  %s100_s20 = sshll.u32 %s173_s0, 4  ;;  %s101_s20 = int_to_ptr.vmem [resolvable:$true] %s100_s20 }
  0x19   :  { %v42_v18 = vadd.f32 %v40_v12, %v37_v5  ;;  %v58_v19 = vrot.slane %v56_v14, 1  ;;  %v63_v20 = vrot.slane %v61_v15, 2  ;;  %s144_s21 = scalar_lea.vmem %s101_s20, 16  ;;  %s148_s22 = scalar_lea.vmem %s101_s20, 32 }
  0x1a   :  { %v35_v21 = vadd.f32 %v33_v9, %v30_v16  ;;  %v53_v22 = vadd.f32 %v51_v17, %v30_v16  ;;  %p145_p8 = scmp.ne.s32.totalorder %s101_s20, %s144_s21  ;;  %p149_p9 = scmp.lt.s32.totalorder %s101_s20, %s101_s20 }
  0x1b   :  { %v47_v23 = vadd.f32 %v45_v13, %v42_v18  ;;  %v60_v24 = vadd.f32 %v58_v19, %v55_v11  ;;  %p150_p10 = scmp.lt.s32.totalorder %s148_s22, %s144_s21 }
  0x1c   :  { %v36_v25 = vmax.f32 %v35_v21, 0.0  ;;  %v54_v27 = vmax.f32 %v53_v22, 0.0 }
  0x1d   :  { %v48_v26 = vmax.f32 %v47_v23, 0.0  ;;  %v65_v28 = vadd.f32 %v63_v20, %v60_v24  ;;  %p151_p11 = por %p150_p10, %p149_p9 }
  0x1e   :  { %v67_v30 = vmul.f32 -1.38, %v36_v25  ;;  %v74_v33 = vmul.f32 0.35, %v54_v27 }
  0x1f   :  { %v66_v29 = vmax.f32 %v65_v28, 0.0  ;;  %v68_v31 = vmul.f32 1.29, %v48_v26  ;;  %p152_p12 = pnand %p151_p11, %p145_p8 }
  0x21   :  { %v70_v32 = vrot.slane %v68_v31, 3  ;;  %v75_v34 = vmul.f32 -0.73, %v66_v29 }
  0x23   :  { %v72_v35 = vadd.f32 %v70_v32, %v67_v30  ;;  %v77_v36 = vrot.slane %v75_v34, 3 }
  0x25   :  { %114 = vtanh.f32 %v72_v35  ;;  %v79_v37 = vadd.f32 %v77_v36, %v74_v33 }
  0x27   :  { %116 = vtanh.f32 %v79_v37 }
  0x2f   :  { %v115_v38 = vpop.eup %114 }
  0x30   :  { %v81_v40 = vmul.f32 0.86, %v115_v38 }
  0x31   :  { %v117_v39 = vpop.eup %116 }
  0x32   :  { %v82_v41 = vmul.f32 -0.84, %v117_v39 }
  0x34   :  { %v84_v42 = vrot.slane %v82_v41, 6 }
  0x36   :  { %v86_v43 = vadd.f32 %v84_v42, %v81_v40 }
  0x38   :  { %v109_v44 = vmul.f32 -1.442695, %v86_v43 }
  0x3a   :  { %118 = vpow2.f32 %v109_v44 }
  0x44   :  { %v119_v45 = vpop.eup %118 }
  0x45   :  { %v90_v46 = vadd.f32 1.0, %v119_v45 }
  0x47   :  { %120 = vrcp.f32 %v90_v46 }
  0x51   :  { %v121_v47 = vpop.eup %120 }
  0x52   :  { %93 = vst [vmem:[#allocation5] sm:$0x1] %v121_v47 }
  0x53   :  { %155 = shalt.err (!%p152_p12)
}
  0x54   :  { %s156_s25 = scalar_lea.hbm %s209_s1, 16 }
  0x55   :  { %p157_p13 = scmp.ne.s32.totalorder %s209_s1, %s156_s25  ;;  %p160_p0 = scmp.lt.u32.totalorder %s156_s25, %s209_s1 }
  0x57   :  { %p162_p1 = pnand %p160_p0, %p157_p13 }
  0x59   :  { %165 = shalt.err (!%p162_p1)
}
  0x5a   :  { %103 = dma.vmem_to_hbm [thread:$0]  %s101_s20, 16, %s209_s1, [#allocation4]  }
  0x5b   :  { %168 = dma.done.wait [#allocation4], 16  }
  0x5c   :  { %169 = vsyncadd [#allocation4], 4294967280 }
  0x5d   :  { %107 = vsyncpa [#allocation3], 1 }
  0x5e   :  { %108 = vsyncpa [#allocation4], 1 }

</bundles_post_ra>
